<compile_context>
chip_gen: v7x
topology: tpu7x:2x2x1
jax: 0.10.0
libtpu: 0.0.40
codegen_flags: <defaults>
</compile_context>

<pallas_src>
import jax
import jax.numpy as jnp
from jax.experimental import pallas as pl
from jax.experimental.pallas import tpu as pltpu

KERNEL_SIZE = 32
H_SIZE = 1024
NUM_CLASS = 4
TILE_B = 64            # max batch rows per grid step (capped to the padded batch)


def _round_up(a, m):
    return ((a + m - 1) // m) * m


# ----------------------------- parameter / constant glue -----------------------------

def _wavelet_filter(w, fc):
    # psi.real = w/sqrt(pi) * exp(-w^2 n^2) * cos(2*pi*fc*n),  n = -K/2 .. K/2-1
    n = jnp.arange(-KERNEL_SIZE // 2, KERNEL_SIZE // 2, dtype=jnp.float32)
    w0 = w[0, 0]
    fc0 = fc[0, 0]
    psi = (w0 / jnp.sqrt(jnp.pi)) * jnp.exp(-(w0 ** 2) * (n ** 2)) * jnp.cos(
        2.0 * jnp.pi * fc0 * n)
    return psi  # (K,)


def _conv_toeplitz(psi, L, N):
    # T[j, i] = psi[j - i] for 0 <= j - i < K else 0  ==>  valid cross-corr == x @ T
    j = jnp.arange(L)[:, None]
    i = jnp.arange(N)[None, :]
    d = j - i
    mask = (d >= 0) & (d < KERNEL_SIZE)
    T = jnp.where(mask, jnp.take(psi, jnp.clip(d, 0, KERNEL_SIZE - 1)), 0.0)
    return T.astype(jnp.float32)


def _hilbert_matrices(N):
    # analytic(wave) = wave @ M   with   M = F @ diag(h) @ Finv
    k = jnp.arange(N)
    ang = 2.0 * jnp.pi * jnp.outer(k, k).astype(jnp.float32) / N
    F = jnp.exp(-1j * ang).astype(jnp.complex64)
    Finv = jnp.exp(1j * ang).astype(jnp.complex64) / N
    h = jnp.zeros((N,), jnp.complex64)
    if N % 2 == 0:
        h = h.at[0].set(1.0).at[N // 2].set(1.0).at[1:N // 2].set(2.0)
    else:
        h = h.at[0].set(1.0).at[1:(N + 1) // 2].set(2.0)
    A = Finv @ (h[:, None] * F)
    M = A.T
    return jnp.real(M).astype(jnp.float32), jnp.imag(M).astype(jnp.float32)


# ----------------------------------- Pallas kernel -----------------------------------

def _make_kernel(N, tb, inv_b):
    inv_n = 1.0 / float(N)
    inv_nm1 = 1.0 / float(N - 1)
    inv_n2 = 1.0 / float(N * N)
    n_plus_2 = float(N + 2)

    def kernel(x_ref, tm_ref, alpha_ref, bias_ref, beta_ref, out_ref,
               nse_scr, drow_scr):
        # Fused wavelet conv + Hilbert analytic signal: ONE (tb,Lp)x(Lp,2N) MXU matmul,
        # re/im sliced at the 128-lane boundary (layout-free).
        ri = jnp.dot(x_ref[...], tm_ref[...], preferred_element_type=jnp.float32)
        re = ri[:, :N]
        im = ri[:, N:]
        env2 = re * re + im * im                          # |analytic|^2, (tb, N)

        s = jnp.sum(env2, axis=-1, keepdims=True)         # (tb, 1)
        nse = env2 * (1.0 / s)                            # NSE, rows sum to ~1
        nse_sum = jnp.sum(nse, axis=-1, keepdims=True)    # (tb, 1)

        # kurtosis (torch.var is unbiased -> /(N-1))
        m = nse_sum * inv_n
        d = nse - m
        d2 = d * d
        kurt_num = jnp.sum(d2 * d2, axis=-1, keepdims=True) * inv_n
        var = jnp.sum(d2, axis=-1, keepdims=True) * inv_nm1
        kurt = kurt_num / (var * var)

        # entropy: nse*log(nse) with log(nse) = log(env2) - log(s);
        # log(env2) is computed once and reused by the smoothness product below.
        lg = jnp.log(env2)                                # (tb, N)
        log_s = jnp.log(s)                                # (tb, 1)
        ent = (jnp.sum(nse * lg, axis=-1, keepdims=True) - log_s * nse_sum) * inv_n

        # reciprocal smoothness: prod(env2) via EUP exp(sum(log)), exponent 1/B as in
        # the reference (B = true batch size).
        prod = jnp.exp(jnp.sum(lg, axis=-1, keepdims=True))
        g = jnp.exp(jnp.log(prod + 1e-6) * inv_b)         # (prod + 1e-6) ** (1/B)
        recip = jnp.sum(nse * env2, axis=-1, keepdims=True) / g

        # gini via the exact pairwise |difference| identity (no sort, no triu mask):
        #   gini = (0.5 * sum_{j,k}|nse_j - nse_k| - (N+2) * sum_j nse_j) / N^2
        # One row at a time from a VMEM scratch keeps the (N,N) working set at 64 KiB.
        nse_scr[...] = nse

        def gini_row(b, carry):
            r = nse_scr[pl.ds(b, 1), :]                   # (1, N)
            rm = jnp.broadcast_to(r, (N, N))              # rm[k, j] = nse_j
            dmat = jnp.abs(rm - rm.T)                     # |nse_j - nse_k|
            # sum over k (sublanes) -> per-j row; final lane reduce happens batched.
            drow_scr[pl.ds(b, 1), :] = jnp.sum(dmat, axis=0, keepdims=True)
            return carry

        jax.lax.fori_loop(0, tb, gini_row, 0)
        D = jnp.sum(drow_scr[...], axis=-1, keepdims=True)   # (tb, 1)
        gini = (0.5 * D - n_plus_2 * nse_sum) * inv_n2

        # ReLU features -> ELM: sigmoid(f @ alpha + bias) @ beta (beta lane-padded)
        f0 = jnp.maximum(kurt, 0.0)
        f1 = jnp.maximum(ent, 0.0)
        f2 = jnp.maximum(gini, 0.0)
        f3 = jnp.maximum(recip, 0.0)
        pre = (f0 * alpha_ref[0:1, :] + f1 * alpha_ref[1:2, :]
               + f2 * alpha_ref[2:3, :] + f3 * alpha_ref[3:4, :] + bias_ref[...])
        h = pl.reciprocal(1.0 + jnp.exp(-pre), approx=True)   # sigmoid, divide on EUP
        out_ref[...] = jnp.dot(h, beta_ref[...], preferred_element_type=jnp.float32)

    return kernel


# -------------------------------------- wrapper ---------------------------------------

def dong_elm_forward(x, params, tile_b=TILE_B):
    B, C, L = x.shape
    assert C == 1
    N = L - KERNEL_SIZE + 1
    assert N > 1
    h_size = params["alpha"].shape[1]
    num_class = params["beta"].shape[1]
    out_pad = _round_up(num_class, 128)                  # lane-dense output store

    # Fold the learnable wavelet conv (Toeplitz) into the Hilbert DFT matrices and
    # fuse re/im into a single (Lp, 2N) RHS -> one MXU matmul in the kernel.
    psi = _wavelet_filter(params["w"], params["fc"])
    Lp = _round_up(L, 8)
    T = _conv_toeplitz(psi, L, N)
    Tp = jnp.pad(T, ((0, Lp - L), (0, 0)))
    m_re, m_im = _hilbert_matrices(N)
    tm = jnp.concatenate([Tp @ m_re, Tp @ m_im], axis=1)  # (Lp, 2N)

    # batch tile: >= 8, capped by TILE_B, and sized for >= 2 grid steps when B > 8
    if B <= 8:
        tb = 8
    else:
        tb = min(tile_b, _round_up((B + 1) // 2, 8))
    bp = _round_up(B, tb)

    # pad signal length (zeros, harmless) and batch (edge rows, kept well-defined)
    x2d = jnp.pad(x[:, 0, :].astype(jnp.float32), ((0, 0), (0, Lp - L)))
    x2d = jnp.pad(x2d, ((0, bp - B), (0, 0)), mode="edge")

    alpha = params["alpha"].astype(jnp.float32)
    bias = params["bias"].reshape(1, h_size).astype(jnp.float32)
    beta = jnp.pad(params["beta"].astype(jnp.float32),
                   ((0, 0), (0, out_pad - num_class)))

    kernel = _make_kernel(N, tb, 1.0 / B)
    const = lambda i: (0, 0)                             # resident constant blocks

    out = pl.pallas_call(
        kernel,
        out_shape=jax.ShapeDtypeStruct((bp, out_pad), jnp.float32),
        grid=(bp // tb,),
        in_specs=[
            pl.BlockSpec((tb, Lp), lambda i: (i, 0)),    # signal tile
            pl.BlockSpec((Lp, 2 * N), const),            # folded conv+Hilbert [re|im]
            pl.BlockSpec((4, h_size), const),            # ELM alpha
            pl.BlockSpec((1, h_size), const),            # ELM bias
            pl.BlockSpec((h_size, out_pad), const),      # ELM beta (lane-padded)
        ],
        out_specs=pl.BlockSpec((tb, out_pad), lambda i: (i, 0)),
        scratch_shapes=[
            pltpu.VMEM((tb, N), jnp.float32),            # nse rows for the gini loop
            pltpu.VMEM((tb, N), jnp.float32),            # per-row |diff| partial sums
        ],
        compiler_params=pltpu.CompilerParams(
            dimension_semantics=("parallel",),
            vmem_limit_bytes=32 * 1024 * 1024),
    )(x2d, tm, alpha, bias, beta)
    return out[:B, :num_class]


# ---------------------------- pure-JAX reference (sanity) -----------------------------

def reference_forward(x, params):
    B, _, L = x.shape
    N = L - KERNEL_SIZE + 1
    psi = _wavelet_filter(params["w"], params["fc"])
    x2d = x[:, 0, :]
    wave = sum(psi[k] * x2d[:, k:k + N] for k in range(KERNEL_SIZE))
    Xf = jnp.fft.fft(wave)
    h = jnp.zeros((N,), Xf.dtype)
    if N % 2 == 0:
        h = h.at[0].set(1).at[N // 2].set(1).at[1:N // 2].set(2)
    else:
        h = h.at[0].set(1).at[1:(N + 1) // 2].set(2)
    env = jnp.abs(jnp.fft.ifft(Xf * h))
    x2 = env ** 2
    S = jnp.sum(x2, -1, keepdims=True)
    nse = x2 / S
    m = jnp.mean(nse, -1, keepdims=True)
    var = jnp.sum((nse - m) ** 2, -1, keepdims=True) / (N - 1)
    kurt = jnp.mean((nse - m) ** 4, -1, keepdims=True) / (var * var)
    ent = jnp.mean(nse * jnp.log(nse), -1, keepdims=True)
    coef = (-2.0 * N + 2.0 * jnp.arange(N, dtype=jnp.float32) - 1.0) / N
    gini = jnp.mean(jnp.sort(nse, -1) * coef, -1, keepdims=True)
    prod = jnp.prod(x2, -1, keepdims=True)
    a = x2 / (prod + 1e-6) ** (1.0 / B)
    recip = jnp.sum(nse * a, -1, keepdims=True)
    feats = jax.nn.relu(jnp.concatenate([kurt, ent, gini, recip], axis=-1))
    hid = jax.nn.sigmoid(feats @ params["alpha"] + params["bias"])
    return hid @ params["beta"]


# ---------------------------------------- main -----------------------------------------

if __name__ == "__main__":
    key = jax.random.PRNGKey(0)
    kw, kfc, ka, kb, kx = jax.random.split(key, 5)
    params = {
        "w": jax.random.normal(kw, (1, 1), jnp.float32),       # LearnableWaveletLayer.w
        "fc": jax.random.normal(kfc, (1, 1), jnp.float32),     # LearnableWaveletLayer.fc
        "alpha": jax.random.uniform(ka, (4, H_SIZE), jnp.float32, -1.0, 1.0),
        "beta": jax.random.uniform(kb, (H_SIZE, NUM_CLASS), jnp.float32, -1.0, 1.0),
        "bias": jnp.zeros((H_SIZE,), jnp.float32),
    }
    # (batch, in_channels=1, signal_length); length 159 -> conv output length 128
    x = jax.random.normal(kx, (2, 1, 159), jnp.float32)

    out = jax.block_until_ready(jax.jit(dong_elm_forward)(x, params))
    ref = jax.block_until_ready(reference_forward(x, params))

    assert out.shape == (2, NUM_CLASS), out.shape
    assert bool(jnp.all(jnp.isfinite(out))), out
    assert bool(jnp.allclose(out, ref, rtol=5e-2, atol=5e-2)), (out, ref)
    print("KERNEL_OK")
</pallas_src>

<mosaic_0001>
module attributes {stable_mosaic.version = 11 : i64} {
  func.func @kernel(%arg0: i32, %arg1: memref<8x160xf32, #tpu.memory_space<vmem>>, %arg2: memref<160x256xf32, #tpu.memory_space<vmem>>, %arg3: memref<4x1024xf32, #tpu.memory_space<vmem>>, %arg4: memref<1x1024xf32, #tpu.memory_space<vmem>>, %arg5: memref<1024x128xf32, #tpu.memory_space<vmem>>, %arg6: memref<8x128xf32, #tpu.memory_space<vmem>>, %arg7: memref<8x128xf32, #tpu.memory_space<vmem>>, %arg8: memref<8x128xf32, #tpu.memory_space<vmem>>) attributes {dimension_semantics = [#tpu.dimension_semantics<parallel>], iteration_bounds = array<i64: 1>, scalar_prefetch = 0 : i64, scratch_operands = 2 : i64, tpu.core_type = #tpu.core_type<tc>, window_params = [{transform_indices = @transform_0, window_bounds = array<i64: 8, 160>}, {pipeline_mode = #tpu.pipeline_mode<synchronous>, transform_indices = @transform_1, window_bounds = array<i64: 160, 256>}, {pipeline_mode = #tpu.pipeline_mode<synchronous>, transform_indices = @transform_2, window_bounds = array<i64: 4, 1024>}, {pipeline_mode = #tpu.pipeline_mode<synchronous>, transform_indices = @transform_3, window_bounds = array<i64: 1, 1024>}, {pipeline_mode = #tpu.pipeline_mode<synchronous>, transform_indices = @transform_4, window_bounds = array<i64: 1024, 128>}, {transform_indices = @transform_5, window_bounds = array<i64: 8, 128>}]} {
    %c0 = arith.constant 0 : index
    %c0_0 = arith.constant 0 : index
    %0 = vector.load %arg1[%c0, %c0_0] : memref<8x160xf32, #tpu.memory_space<vmem>>, vector<8x160xf32>
    %c0_1 = arith.constant 0 : index
    %c0_2 = arith.constant 0 : index
    %1 = vector.load %arg2[%c0_1, %c0_2] : memref<160x256xf32, #tpu.memory_space<vmem>>, vector<160x256xf32>
    %cst = arith.constant dense<0.000000e+00> : vector<8x256xf32>
    %2 = tpu.matmul %0, %1, %cst {dimension_numbers = #tpu.dot_dimension_numbers<[1], [0], [0], [1], [0, 0, 1, 1], [], []>} : vector<8x160xf32>, vector<160x256xf32>, vector<8x256xf32> -> vector<8x256xf32>
    %3 = vector.extract_strided_slice %2 {offsets = [0, 0], sizes = [8, 128], strides = [1, 1]} : vector<8x256xf32> to vector<8x128xf32>
    %4 = vector.extract_strided_slice %2 {offsets = [0, 128], sizes = [8, 128], strides = [1, 1]} : vector<8x256xf32> to vector<8x128xf32>
    %5 = arith.mulf %3, %3 : vector<8x128xf32>
    %6 = arith.mulf %4, %4 : vector<8x128xf32>
    %7 = arith.addf %5, %6 : vector<8x128xf32>
    %cst_3 = arith.constant dense<0.000000e+00> : vector<8xf32>
    %8 = vector.multi_reduction <add>, %7, %cst_3 [1] : vector<8x128xf32> to vector<8xf32>
    %9 = vector.shape_cast %8 : vector<8xf32> to vector<8x1xf32>
    %cst_4 = arith.constant 1.000000e+00 : f32
    %10 = vector.broadcast %cst_4 : f32 to vector<8x1xf32>
    %11 = arith.divf %10, %9 : vector<8x1xf32>
    %12 = vector.broadcast %11 : vector<8x1xf32> to vector<8x128xf32>
    %13 = arith.mulf %7, %12 : vector<8x128xf32>
    %cst_5 = arith.constant dense<0.000000e+00> : vector<8xf32>
    %14 = vector.multi_reduction <add>, %13, %cst_5 [1] : vector<8x128xf32> to vector<8xf32>
    %15 = vector.shape_cast %14 : vector<8xf32> to vector<8x1xf32>
    %cst_6 = arith.constant 7.812500e-03 : f32
    %16 = vector.broadcast %cst_6 : f32 to vector<8x1xf32>
    %17 = arith.mulf %15, %16 : vector<8x1xf32>
    %18 = vector.broadcast %17 : vector<8x1xf32> to vector<8x128xf32>
    %19 = arith.subf %13, %18 : vector<8x128xf32>
    %20 = arith.mulf %19, %19 : vector<8x128xf32>
    %21 = arith.mulf %20, %20 : vector<8x128xf32>
    %cst_7 = arith.constant dense<0.000000e+00> : vector<8xf32>
    %22 = vector.multi_reduction <add>, %21, %cst_7 [1] : vector<8x128xf32> to vector<8xf32>
    %23 = vector.shape_cast %22 : vector<8xf32> to vector<8x1xf32>
    %cst_8 = arith.constant 7.812500e-03 : f32
    %24 = vector.broadcast %cst_8 : f32 to vector<8x1xf32>
    %25 = arith.mulf %23, %24 : vector<8x1xf32>
    %cst_9 = arith.constant dense<0.000000e+00> : vector<8xf32>
    %26 = vector.multi_reduction <add>, %20, %cst_9 [1] : vector<8x128xf32> to vector<8xf32>
    %27 = vector.shape_cast %26 : vector<8xf32> to vector<8x1xf32>
    %cst_10 = arith.constant 0.00787401571 : f32
    %28 = vector.broadcast %cst_10 : f32 to vector<8x1xf32>
    %29 = arith.mulf %27, %28 : vector<8x1xf32>
    %30 = arith.mulf %29, %29 : vector<8x1xf32>
    %31 = arith.divf %25, %30 : vector<8x1xf32>
    %32 = math.log %7 : vector<8x128xf32>
    %33 = math.log %9 : vector<8x1xf32>
    %34 = arith.mulf %13, %32 : vector<8x128xf32>
    %cst_11 = arith.constant dense<0.000000e+00> : vector<8xf32>
    %35 = vector.multi_reduction <add>, %34, %cst_11 [1] : vector<8x128xf32> to vector<8xf32>
    %36 = vector.shape_cast %35 : vector<8xf32> to vector<8x1xf32>
    %37 = arith.mulf %33, %15 : vector<8x1xf32>
    %38 = arith.subf %36, %37 : vector<8x1xf32>
    %cst_12 = arith.constant 7.812500e-03 : f32
    %39 = vector.broadcast %cst_12 : f32 to vector<8x1xf32>
    %40 = arith.mulf %38, %39 : vector<8x1xf32>
    %cst_13 = arith.constant dense<0.000000e+00> : vector<8xf32>
    %41 = vector.multi_reduction <add>, %32, %cst_13 [1] : vector<8x128xf32> to vector<8xf32>
    %42 = vector.shape_cast %41 : vector<8xf32> to vector<8x1xf32>
    %43 = math.exp %42 : vector<8x1xf32>
    %cst_14 = arith.constant 9.99999997E-7 : f32
    %44 = vector.broadcast %cst_14 : f32 to vector<8x1xf32>
    %45 = arith.addf %43, %44 : vector<8x1xf32>
    %46 = math.log %45 : vector<8x1xf32>
    %cst_15 = arith.constant 5.000000e-01 : f32
    %47 = vector.broadcast %cst_15 : f32 to vector<8x1xf32>
    %48 = arith.mulf %46, %47 : vector<8x1xf32>
    %49 = math.exp %48 : vector<8x1xf32>
    %50 = arith.mulf %13, %7 : vector<8x128xf32>
    %cst_16 = arith.constant dense<0.000000e+00> : vector<8xf32>
    %51 = vector.multi_reduction <add>, %50, %cst_16 [1] : vector<8x128xf32> to vector<8xf32>
    %52 = vector.shape_cast %51 : vector<8xf32> to vector<8x1xf32>
    %53 = arith.divf %52, %49 : vector<8x1xf32>
    %c0_17 = arith.constant 0 : index
    %c0_18 = arith.constant 0 : index
    %54 = vector.load %arg7[%c0_17, %c0_18] : memref<8x128xf32, #tpu.memory_space<vmem>>, vector<8x128xf32>
    tpu.vector_store %arg7[%c0_17, %c0_18], %13 {strides = array<i32>} : memref<8x128xf32, #tpu.memory_space<vmem>>, vector<8x128xf32>,
    %c0_i32 = arith.constant 0 : i32
    %c8_i32 = arith.constant 8 : i32
    %55 = arith.addi %c0_i32, %c8_i32 : i32
    %c1_i32 = arith.constant 1 : i32
    scf.for %arg9 = %c0_i32 to %55 step %c1_i32  : i32 {
      %105 = arith.index_cast %arg9 : i32 to index
      %c0_44 = arith.constant 0 : index
      %106 = vector.load %arg7[%105, %c0_44] : memref<8x128xf32, #tpu.memory_space<vmem>>, vector<1x128xf32>
      %107 = vector.shape_cast %106 : vector<1x128xf32> to vector<1x128xf32>
      %108 = vector.broadcast %107 : vector<1x128xf32> to vector<128x128xf32>
      %109 = tpu.transpose %108, [1, 0] : vector<128x128xf32> -> vector<128x128xf32>
      %110 = arith.subf %108, %109 : vector<128x128xf32>
      %111 = math.absf %110 : vector<128x128xf32>
      %cst_45 = arith.constant dense<0.000000e+00> : vector<128xf32>
      %112 = vector.multi_reduction <add>, %111, %cst_45 [0] : vector<128x128xf32> to vector<128xf32>
      %113 = vector.shape_cast %112 : vector<128xf32> to vector<1x128xf32>
      %114 = arith.index_cast %arg9 : i32 to index
      %c0_46 = arith.constant 0 : index
      %115 = vector.load %arg8[%114, %c0_46] : memref<8x128xf32, #tpu.memory_space<vmem>>, vector<1x128xf32>
      tpu.vector_store %arg8[%114, %c0_46], %113 {strides = array<i32>} : memref<8x128xf32, #tpu.memory_space<vmem>>, vector<1x128xf32>,
    }
    %c8_i32_19 = arith.constant 8 : i32
    %c0_20 = arith.constant 0 : index
    %c0_21 = arith.constant 0 : index
    %56 = vector.load %arg8[%c0_20, %c0_21] : memref<8x128xf32, #tpu.memory_space<vmem>>, vector<8x128xf32>
    %cst_22 = arith.constant dense<0.000000e+00> : vector<8xf32>
    %57 = vector.multi_reduction <add>, %56, %cst_22 [1] : vector<8x128xf32> to vector<8xf32>
    %58 = vector.shape_cast %57 : vector<8xf32> to vector<8x1xf32>
    %cst_23 = arith.constant 5.000000e-01 : f32
    %59 = vector.broadcast %cst_23 : f32 to vector<8x1xf32>
    %60 = arith.mulf %59, %58 : vector<8x1xf32>
    %cst_24 = arith.constant 1.300000e+02 : f32
    %61 = vector.broadcast %cst_24 : f32 to vector<8x1xf32>
    %62 = arith.mulf %61, %15 : vector<8x1xf32>
    %63 = arith.subf %60, %62 : vector<8x1xf32>
    %cst_25 = arith.constant 6.10351563E-5 : f32
    %64 = vector.broadcast %cst_25 : f32 to vector<8x1xf32>
    %65 = arith.mulf %63, %64 : vector<8x1xf32>
    %cst_26 = arith.constant 0.000000e+00 : f32
    %66 = vector.broadcast %cst_26 : f32 to vector<8x1xf32>
    %67 = arith.maximumf %31, %66 : vector<8x1xf32>
    %cst_27 = arith.constant 0.000000e+00 : f32
    %68 = vector.broadcast %cst_27 : f32 to vector<8x1xf32>
    %69 = arith.maximumf %40, %68 : vector<8x1xf32>
    %cst_28 = arith.constant 0.000000e+00 : f32
    %70 = vector.broadcast %cst_28 : f32 to vector<8x1xf32>
    %71 = arith.maximumf %65, %70 : vector<8x1xf32>
    %cst_29 = arith.constant 0.000000e+00 : f32
    %72 = vector.broadcast %cst_29 : f32 to vector<8x1xf32>
    %73 = arith.maximumf %53, %72 : vector<8x1xf32>
    %c0_30 = arith.constant 0 : index
    %c0_31 = arith.constant 0 : index
    %74 = vector.load %arg3[%c0_30, %c0_31] : memref<4x1024xf32, #tpu.memory_space<vmem>>, vector<1x1024xf32>
    %75 = vector.broadcast %67 : vector<8x1xf32> to vector<8x1024xf32>
    %76 = vector.broadcast %74 : vector<1x1024xf32> to vector<8x1024xf32>
    %77 = arith.mulf %75, %76 : vector<8x1024xf32>
    %c1 = arith.constant 1 : index
    %c0_32 = arith.constant 0 : index
    %78 = vector.load %arg3[%c1, %c0_32] : memref<4x1024xf32, #tpu.memory_space<vmem>>, vector<1x1024xf32>
    %79 = vector.broadcast %69 : vector<8x1xf32> to vector<8x1024xf32>
    %80 = vector.broadcast %78 : vector<1x1024xf32> to vector<8x1024xf32>
    %81 = arith.mulf %79, %80 : vector<8x1024xf32>
    %82 = arith.addf %77, %81 : vector<8x1024xf32>
    %c2 = arith.constant 2 : index
    %c0_33 = arith.constant 0 : index
    %83 = vector.load %arg3[%c2, %c0_33] : memref<4x1024xf32, #tpu.memory_space<vmem>>, vector<1x1024xf32>
    %84 = vector.broadcast %71 : vector<8x1xf32> to vector<8x1024xf32>
    %85 = vector.broadcast %83 : vector<1x1024xf32> to vector<8x1024xf32>
    %86 = arith.mulf %84, %85 : vector<8x1024xf32>
    %87 = arith.addf %82, %86 : vector<8x1024xf32>
    %c3 = arith.constant 3 : index
    %c0_34 = arith.constant 0 : index
    %88 = vector.load %arg3[%c3, %c0_34] : memref<4x1024xf32, #tpu.memory_space<vmem>>, vector<1x1024xf32>
    %89 = vector.broadcast %73 : vector<8x1xf32> to vector<8x1024xf32>
    %90 = vector.broadcast %88 : vector<1x1024xf32> to vector<8x1024xf32>
    %91 = arith.mulf %89, %90 : vector<8x1024xf32>
    %92 = arith.addf %87, %91 : vector<8x1024xf32>
    %c0_35 = arith.constant 0 : index
    %c0_36 = arith.constant 0 : index
    %93 = vector.load %arg4[%c0_35, %c0_36] : memref<1x1024xf32, #tpu.memory_space<vmem>>, vector<1x1024xf32>
    %94 = vector.broadcast %93 : vector<1x1024xf32> to vector<8x1024xf32>
    %95 = arith.addf %92, %94 : vector<8x1024xf32>
    %cst_37 = arith.constant 0.000000e+00 : f32
    %96 = vector.broadcast %cst_37 : f32 to vector<8x1024xf32>
    %97 = arith.subf %96, %95 : vector<8x1024xf32>
    %98 = math.exp %97 : vector<8x1024xf32>
    %cst_38 = arith.constant 1.000000e+00 : f32
    %99 = vector.broadcast %cst_38 : f32 to vector<8x1024xf32>
    %100 = arith.addf %99, %98 : vector<8x1024xf32>
    %101 = tpu.reciprocal %100 {approx = true} : vector<8x1024xf32> -> vector<8x1024xf32>
    %c0_39 = arith.constant 0 : index
    %c0_40 = arith.constant 0 : index
    %102 = vector.load %arg5[%c0_39, %c0_40] : memref<1024x128xf32, #tpu.memory_space<vmem>>, vector<1024x128xf32>
    %cst_41 = arith.constant dense<0.000000e+00> : vector<8x128xf32>
    %103 = tpu.matmul %101, %102, %cst_41 {dimension_numbers = #tpu.dot_dimension_numbers<[1], [0], [0], [1], [0, 0, 1, 1], [], []>} : vector<8x1024xf32>, vector<1024x128xf32>, vector<8x128xf32> -> vector<8x128xf32>
    %c0_42 = arith.constant 0 : index
    %c0_43 = arith.constant 0 : index
    %104 = vector.load %arg6[%c0_42, %c0_43] : memref<8x128xf32, #tpu.memory_space<vmem>>, vector<8x128xf32>
    tpu.vector_store %arg6[%c0_42, %c0_43], %103 {strides = array<i32>} : memref<8x128xf32, #tpu.memory_space<vmem>>, vector<8x128xf32>,
    return
  }
  func.func @transform_0(%arg0: i32) -> (i32, i32) {
    %c0_i32 = arith.constant 0 : i32
    %c0_i32_0 = arith.constant 0 : i32
    return %arg0, %c0_i32 : i32, i32
  }
  func.func @transform_1(%arg0: i32) -> (i32, i32) {
    %c0_i32 = arith.constant 0 : i32
    %c0_i32_0 = arith.constant 0 : i32
    %c0_i32_1 = arith.constant 0 : i32
    return %c0_i32, %c0_i32_0 : i32, i32
  }
  func.func @transform_2(%arg0: i32) -> (i32, i32) {
    %c0_i32 = arith.constant 0 : i32
    %c0_i32_0 = arith.constant 0 : i32
    %c0_i32_1 = arith.constant 0 : i32
    return %c0_i32, %c0_i32_0 : i32, i32
  }
  func.func @transform_3(%arg0: i32) -> (i32, i32) {
    %c0_i32 = arith.constant 0 : i32
    %c0_i32_0 = arith.constant 0 : i32
    %c0_i32_1 = arith.constant 0 : i32
    return %c0_i32, %c0_i32_0 : i32, i32
  }
  func.func @transform_4(%arg0: i32) -> (i32, i32) {
    %c0_i32 = arith.constant 0 : i32
    %c0_i32_0 = arith.constant 0 : i32
    %c0_i32_1 = arith.constant 0 : i32
    return %c0_i32, %c0_i32_0 : i32, i32
  }
  func.func @transform_5(%arg0: i32) -> (i32, i32) {
    %c0_i32 = arith.constant 0 : i32
    %c0_i32_0 = arith.constant 0 : i32
    return %arg0, %c0_i32 : i32, i32
  }
}

</mosaic_0001>

<bundles_post_ra>
// kernel: dong_elm_forward.1
= control target key start
LH: loop header
LB: loop body
LE: loop exit
PB: predicated region body
PF: predicated region fallthrough
CT: control target
= control target key end

     0   :  { %vm62_vm0 = vcmask 261120   ;;  %s2183_s1 = inlined_call_operand.vmem [shape: f32[160,256], index: 1, kind: input, shape index: {}]   ;;  %s2184_s2 = inlined_call_operand.vmem [shape: f32[4,1024], index: 2, kind: input, shape index: {}]   ;;  %s2185_s3 = inlined_call_operand.vmem [shape: f32[1,1024], index: 3, kind: input, shape index: {}]   ;;  %s2186_s4 = inlined_call_operand.vmem [shape: f32[1024,128], index: 4, kind: input, shape index: {}]   ;;  %s2187_s5 = inlined_call_operand.vmem [shape: f32[8,128], index: 5, kind: output, shape index: {}]   ;;  %s2188_s0 = inlined_call_operand.vmem [shape: f32[8,160], index: 0, kind: input, shape index: {}]  }
   0x1   :  { %v23_v0 = vld [vmem:[%s2183_s1 + $0x8] sm:$0xff]  ;;  %v25_v1 = vld [vmem:[%s2183_s1 + $0x18] sm:$0xff]  ;;  %v22_v2 = vld [vmem:[%s2183_s1] sm:$0xff] }
   0x2   :  { %v1178_v3 = vpack.c.bf16 %v25_v1, %v23_v0  ;;  %v24_v4 = vld [vmem:[%s2183_s1 + $0x10] sm:$0xff]  ;;  %v27_v5 = vld [vmem:[%s2183_s1 + $0x28] sm:$0xff]  ;;  %v29_v6 = vld [vmem:[%s2183_s1 + $0x38] sm:$0xff] }
   0x3   :  { %v1180_v7 = vpack.c.bf16 %v24_v4, %v22_v2  ;;  %v1182_v8 = vpack.c.bf16 %v29_v6, %v27_v5  ;;  %v26_v9 = vld [vmem:[%s2183_s1 + $0x20] sm:$0xff]  ;;  %v28_v10 = vld [vmem:[%s2183_s1 + $0x30] sm:$0xff]  ;;  %v31_v11 = vld [vmem:[%s2183_s1 + $0x48] sm:$0xff] }
   0x4   :  { %1179 = vmatprep.subr.bf16.mxu0 %v1178_v3  ;;  %v33_v12 = vld [vmem:[%s2183_s1 + $0x58] sm:$0xff]  ;;  %v1184_v13 = vpack.c.bf16 %v28_v10, %v26_v9  ;;  %v30_v15 = vld [vmem:[%s2183_s1 + $0x40] sm:$0xff]  ;;  %v32_v16 = vld [vmem:[%s2183_s1 + $0x50] sm:$0xff] }
   0x5   :  { %1181 = vmatpush1.bf16.msra.mxu0 %v1180_v7  ;;  %v1186_v14 = vpack.c.bf16 %v33_v12, %v31_v11  ;;  %v35_v17 = vld [vmem:[%s2183_s1 + $0x68] sm:$0xff]  ;;  %v37_v18 = vld [vmem:[%s2183_s1 + $0x78] sm:$0xff]  ;;  %v1188_v19 = vpack.c.bf16 %v32_v16, %v30_v15  ;;  %v34_v21 = vld [vmem:[%s2183_s1 + $0x60] sm:$0xff] }
   0x6   :  { %1183 = vmatprep.subr.bf16.mxu0 %v1182_v8  ;;  %v1190_v20 = vpack.c.bf16 %v37_v18, %v35_v17  ;;  %v36_v22 = vld [vmem:[%s2183_s1 + $0x70] sm:$0xff]  ;;  %v39_v23 = vld [vmem:[%s2183_s1 + $0x88] sm:$0xff]  ;;  %v41_v24 = vld [vmem:[%s2183_s1 + $0x98] sm:$0xff] }
   0x7   :  { %v1192_v25 = vpack.c.bf16 %v36_v22, %v34_v21  ;;  %v1194_v26 = vpack.c.bf16 %v41_v24, %v39_v23  ;;  %v38_v27 = vld [vmem:[%s2183_s1 + $0x80] sm:$0xff]  ;;  %v40_v28 = vld [vmem:[%s2183_s1 + $0x90] sm:$0xff]  ;;  %v21_v29 = vld [vmem:[%s2188_s0 + $0x8] sm:$0xff] }
   0x8   :  { %v43_v30 = vld [vmem:[%s2183_s1 + $0xa8] sm:$0xff]  ;;  %v45_v31 = vld [vmem:[%s2183_s1 + $0xb8] sm:$0xff]  ;;  %1033 = vmatprep.mubr.msk.f32.mxu0 %vm62_vm0, %v21_v29  ;;  %v1196_v32 = vpack.c.bf16 %v40_v28, %v38_v27  ;;  %v42_v34 = vld [vmem:[%s2183_s1 + $0xa0] sm:$0xff] }
   0x9   :  { %1185 = vmatpush1.bf16.msra.mxu0 %v1184_v13  ;;  %v1198_v33 = vpack.c.bf16 %v45_v31, %v43_v30  ;;  %v44_v35 = vld [vmem:[%s2183_s1 + $0xb0] sm:$0xff]  ;;  %v47_v36 = vld [vmem:[%s2183_s1 + $0xc8] sm:$0xff]  ;;  %v49_v37 = vld [vmem:[%s2183_s1 + $0xd8] sm:$0xff] }
   0xa   :  { %1187 = vmatprep.subr.bf16.mxu0 %v1186_v14  ;;  %v1200_v38 = vpack.c.bf16 %v44_v35, %v42_v34  ;;  %v1202_v39 = vpack.c.bf16 %v49_v37, %v47_v36  ;;  %v46_v40 = vld [vmem:[%s2183_s1 + $0xc0] sm:$0xff]  ;;  %v48_v41 = vld [vmem:[%s2183_s1 + $0xd0] sm:$0xff]  ;;  %v51_v42 = vld [vmem:[%s2183_s1 + $0xe8] sm:$0xff] }
   0xb   :  { %v53_v43 = vld [vmem:[%s2183_s1 + $0xf8] sm:$0xff]  ;;  %v1204_v44 = vpack.c.bf16 %v48_v41, %v46_v40  ;;  %v50_v46 = vld [vmem:[%s2183_s1 + $0xe0] sm:$0xff]  ;;  %v52_v47 = vld [vmem:[%s2183_s1 + $0xf0] sm:$0xff] }
   0xc   :  { %v1206_v45 = vpack.c.bf16 %v53_v43, %v51_v42  ;;  %v55_v48 = vld [vmem:[%s2183_s1 + $0x108] sm:$0xff]  ;;  %v57_v49 = vld [vmem:[%s2183_s1 + $0x118] sm:$0xff]  ;;  %v1208_v50 = vpack.c.bf16 %v52_v47, %v50_v46  ;;  %v54_v52 = vld [vmem:[%s2183_s1 + $0x100] sm:$0xff] }
   0xd   :  { %1189 = vmatpush1.bf16.msra.mxu0 %v1188_v19  ;;  %v1210_v51 = vpack.c.bf16 %v57_v49, %v55_v48  ;;  %v56_v53 = vld [vmem:[%s2183_s1 + $0x110] sm:$0xff]  ;;  %v59_v54 = vld [vmem:[%s2183_s1 + $0x128] sm:$0xff]  ;;  %v61_v55 = vld [vmem:[%s2183_s1 + $0x138] sm:$0xff] }
   0xe   :  { %1191 = vmatprep.subr.bf16.mxu0 %v1190_v20  ;;  %v1212_v56 = vpack.c.bf16 %v56_v53, %v54_v52  ;;  %v1214_v57 = vpack.c.bf16 %v61_v55, %v59_v54  ;;  %v58_v58 = vld [vmem:[%s2183_s1 + $0x120] sm:$0xff]  ;;  %v60_v59 = vld [vmem:[%s2183_s1 + $0x130] sm:$0xff] }
   0xf   :  { %v1216_v60 = vpack.c.bf16 %v60_v59, %v58_v58  ;;  %v20_v61 = vld [vmem:[%s2188_s0] sm:$0xff]  ;;  %s1576_s0 = smov 0  }
  0x11   :  { %1193 = vmatpush1.bf16.msra.mxu0 %v1192_v25 }
  0x12   :  { %1195 = vmatprep.subr.bf16.mxu0 %v1194_v26 }
  0x15   :  { %1197 = vmatpush1.bf16.msra.mxu0 %v1196_v32 }
  0x16   :  { %1199 = vmatprep.subr.bf16.mxu0 %v1198_v33 }
  0x19   :  { %1201 = vmatpush1.bf16.msra.mxu0 %v1200_v38 }
  0x1a   :  { %1203 = vmatprep.subr.bf16.mxu0 %v1202_v39 }
  0x1d   :  { %1205 = vmatpush1.bf16.msra.mxu0 %v1204_v44 }
  0x1e   :  { %1207 = vmatprep.subr.bf16.mxu0 %v1206_v45 }
  0x21   :  { %1209 = vmatpush1.bf16.msra.mxu0 %v1208_v50 }
  0x22   :  { %1211 = vmatprep.subr.bf16.mxu0 %v1210_v51 }
  0x25   :  { %1213 = vmatpush1.bf16.msra.mxu0 %v1212_v56 }
  0x26   :  { %1215 = vmatprep.subr.bf16.mxu0 %v1214_v57 }
  0x29   :  { %1217 = vmatpush1.bf16.msra.mxu0 %v1216_v60 }
  0x2c   :  { %131 = vmatmul.mubr.f32.vlgmr.msra.gmra.mrb[0].mxu0 %v20_v61 }
  0xff   :  { %v132_v62 = vpop.f32.mrb[0].mxu0 }
 0x100   :  { %v137_v63 = vmul.f32 %v132_v62, %v132_v62  ;;  %v134_v0 = vpop.f32.mrb[1].mxu0 }
 0x101   :  { %v138_v1 = vmul.f32 %v134_v0, %v134_v0 }
 0x103   :  { %v139_v2 = vadd.f32 %v138_v1, %v137_v63 }
 0x105   :  { %140 = vadd.xlane.f32.xlu0 %v139_v2  ;;  %1354 = vlog2.f32 %v139_v2 }
 0x10f   :  { %v1355_v3 = vpop.eup %1354 }
 0x110   :  { %v161_v4 = vmul.f32 0.6931472, %v1355_v3 }
 0x112   :  { %170 = vadd.xlane.f32.xlu1 %v161_v4 }
 0x192   :  { %v141_v5 = vpop.xlane.xlu0 %140 }
 0x193   :  { %1356 = vrcp.f32 %v141_v5 }
 0x19d   :  { %v1357_v6 = vpop.eup %1356 }
 0x19e   :  { %v144_v7 = vmul.f32 %v1357_v6, %v139_v2 }
 0x19f   :  { %v171_v15 = vpop.xlane.xlu1 %170 }
 0x1a0   :  { %145 = vadd.xlane.f32.xlu0 %v144_v7  ;;  %185 = vst [vmem:[#allocation2] sm:$0xff] %v144_v7  ;;  %v164_v13 = vmul.f32 %v161_v4, %v144_v7  ;;  %v180_v14 = vmul.f32 %v144_v7, %v139_v2  ;;  %v172_v16 = vmul.f32 1.442695, %v171_v15 }
 0x1a2   :  { %1358 = vpow2.f32 %v172_v16 }
 0x1ac   :  { %v1359_v17 = vpop.eup %1358 }
 0x1ad   :  { %v174_v18 = vadd.f32 1e-06, %v1359_v17 }
 0x1af   :  { %1360 = vlog2.f32 %v174_v18 }
 0x1b9   :  { %v1361_v19 = vpop.eup %1360 }
 0x1ba   :  { %v176_v20 = vmul.f32 0.6931472, %v1361_v19 }
 0x1bc   :  { %v177_v21 = vmul.f32 0.5, %v176_v20 }
 0x1be   :  { %v178_v22 = vmul.f32 1.442695, %v177_v21 }
 0x1c0   :  { %1362 = vpow2.f32 %v178_v22 }
 0x1c1   :  { %1364 = vlog2.f32 %v141_v5 }
 0x1ca   :  { %v1363_v23 = vpop.eup %1362 }
 0x1cb   :  { %1366 = vrcp.f32 %v1363_v23  ;;  %v1365_v24 = vpop.eup %1364 }
 0x1cc   :  { %v163_v26 = vmul.f32 0.6931472, %v1365_v24 }
 0x1d5   :  { %v1367_v33 = vpop.eup %1366 }
 0x22d   :  { %v1566_v8 = vpop.xlane.xlu0 %145 }
 0x22e   :  { %v147_v9 = vmul.f32 0.0078125, %v1566_v8  ;;  %v167_v29 = vmul.f32 %v163_v26, %v1566_v8 }
 0x230   :  { %v148_v10 = vsub.f32 %v144_v7, %v147_v9 }
 0x232   :  { %v149_v11 = vmul.f32 %v148_v10, %v148_v10 }
 0x234   :  { %154 = vadd.xlane.f32.xlu1 %v149_v11  ;;  %v150_v12 = vmul.f32 %v149_v11, %v149_v11 }
 0x236   :  { %151 = vadd.xlane.f32.xlu0 %v150_v12 }
 0x238   :  { %165 = vadd.xlane.f32.xlu1 %v164_v13 }
 0x23a   :  { %181 = vadd.xlane.f32.xlu0 %v180_v14 }
 0x2c1   :  { %v155_v25 = vpop.xlane.xlu1 %154 }
 0x2c2   :  { %v156_v27 = vmul.f32 0.007874016, %v155_v25 }
 0x2c3   :  { %v152_v28 = vpop.xlane.xlu0 %151 }
 0x2c4   :  { %v157_v30 = vmul.f32 %v156_v27, %v156_v27  ;;  %v153_v37 = vmul.f32 0.0078125, %v152_v28 }
 0x2c5   :  { %v166_v31 = vpop.xlane.xlu1 %165 }
 0x2c6   :  { %1368 = vrcp.f32 %v157_v30  ;;  %v168_v32 = vsub.f32 %v166_v31, %v167_v29 }
 0x2c7   :  { %v182_v34 = vpop.xlane.xlu0 %181 }
 0x2c8   :  { %v1570_v35 = vmul.f32 0.0078125, %v168_v32  ;;  %v1572_v36 = vmul.f32 %v1367_v33, %v182_v34 }
 0x2d0   :  { %v1369_v38 = vpop.eup %1368 }
 0x2d1   :  { %v1574_v39 = vmul.f32 %v1369_v38, %v153_v37 }
 0x2d2 LB: > { %s192_s1 = scalar_lea.vmem [#allocation2], %s1408_s0  ;;  %s283_s27 = scalar_lea.vmem [#allocation3], %s1408_s0  ;;  %s1408_s0 = sphi %s1576_s0, %s191_s0  }
 0x2d3   : > { %v1582_v40 = vld [vmem:[%s192_s1] ss:$0 sm:$0xff]  ;;  %s191_s0 = sadd.s32 1, %s1408_s0  }
 0x2d4   : > { %198 = vxpose.xlu0.b32.start [1/16] %v1582_v40, 128  ;;  %p188_p0 = scmp.ge.s32.totalorder %s191_s0, 8  }
 0x2d8   : > { %199 = vxpose.xlu0.b32.cont [2/16] %v1582_v40, 128 }
 0x2dc   : > { %200 = vxpose.xlu0.b32.cont [3/16] %v1582_v40, 128 }
 0x2e0   : > { %201 = vxpose.xlu0.b32.cont [4/16] %v1582_v40, 128 }
 0x2e4   : > { %202 = vxpose.xlu0.b32.cont [5/16] %v1582_v40, 128 }
 0x2e8   : > { %203 = vxpose.xlu0.b32.cont [6/16] %v1582_v40, 128 }
 0x2ec   : > { %204 = vxpose.xlu0.b32.cont [7/16] %v1582_v40, 128 }
 0x2f0   : > { %205 = vxpose.xlu0.b32.cont [8/16] %v1582_v40, 128 }
 0x2f4   : > { %206 = vxpose.xlu0.b32.cont [9/16] %v1582_v40, 128 }
 0x2f8   : > { %207 = vxpose.xlu0.b32.cont [10/16] %v1582_v40, 128 }
 0x2fc   : > { %208 = vxpose.xlu0.b32.cont [11/16] %v1582_v40, 128 }
 0x300   : > { %209 = vxpose.xlu0.b32.cont [12/16] %v1582_v40, 128 }
 0x304   : > { %210 = vxpose.xlu0.b32.cont [13/16] %v1582_v40, 128 }
 0x308   : > { %211 = vxpose.xlu0.b32.cont [14/16] %v1582_v40, 128 }
 0x30c   : > { %212 = vxpose.xlu0.b32.cont [15/16] %v1582_v40, 128 }
 0x310   : > { %213 = vxpose.xlu0.b32.end [16/16] %v1582_v40, 128 }
 0x354   : > { %v214_v41 = vpop.trf.xlu0 }
 0x355   : > { %v230_v50 = vsub.f32 %v1582_v40, %v214_v41 }
 0x357   : > { %v246_v55 = vand.u32 2147483647, %v230_v50 }
 0x358   : > { %v215_v42 = vpop.trf.xlu0 }
 0x359   : > { %v231_v49 = vsub.f32 %v1582_v40, %v215_v42 }
 0x35b   : > { %v247_v53 = vand.u32 2147483647, %v231_v49 }
 0x35c   : > { %v216_v43 = vpop.trf.xlu0 }
 0x35d   : > { %v232_v51 = vsub.f32 %v1582_v40, %v216_v43  ;;  %v262_v59 = vadd.f32 %v247_v53, %v246_v55  ;;  %v1633_v55 = vld [vmem:[%s2184_s2 + $0x1] ss:$4 sm:$0xff] (%p188_p0) }
 0x35f   : > { %v248_v56 = vand.u32 2147483647, %v232_v51 }
 0x360   : > { %v217_v44 = vpop.trf.xlu0 }
 0x361   : > { %v233_v54 = vsub.f32 %v1582_v40, %v217_v44  ;;  %v263_v62 = vadd.f32 %v262_v59, %v248_v56  ;;  %v1636_v56 = vmax.f32 (%p188_p0), %v1574_v39, 0.0  ;;  %v613_v39 = vld [vmem:[%s2186_s4] sm:$0xff] (%p188_p0) }
 0x363   : > { %v249_v60 = vand.u32 2147483647, %v233_v54  ;;  %v1628_v54 = vld [vmem:[%s2184_s2] ss:$4 sm:$0xff] (%p188_p0) }
 0x364   : > { %v218_v45 = vpop.trf.xlu0 }
 0x365   : > { %v234_v57 = vsub.f32 %v1582_v40, %v218_v45  ;;  %v264_v2 = vadd.f32 %v263_v62, %v249_v60  ;;  %v1648_v60 = vld [vmem:[%s2184_s2 + $0x2] ss:$4 sm:$0xff] (%p188_p0) }
 0x367   : > { %v250_v63 = vand.u32 2147483647, %v234_v57  ;;  %v1639_v57 = vmax.f32 (%p188_p0), %v1570_v35, 0.0  ;;  %v630_v35 = vld [vmem:[%s2186_s4 + $0x88] sm:$0xff] (%p188_p0) }
 0x368   : > { %v219_v46 = vpop.trf.xlu0 }
 0x369   : > { %v235_v61 = vsub.f32 %v1582_v40, %v219_v46  ;;  %v265_v5 = vadd.f32 %v264_v2, %v250_v63  ;;  %v614_v63 = vld [vmem:[%s2186_s4 + $0x8] sm:$0xff] (%p188_p0) }
 0x36b   : > { %v251_v3 = vand.u32 2147483647, %v235_v61  ;;  %v629_v61 = vld [vmem:[%s2186_s4 + $0x80] sm:$0xff] (%p188_p0) }
 0x36c   : > { %v220_v47 = vpop.trf.xlu0  ;;  %v1218_v62 = vpack.c.bf16 (%p188_p0), %v630_v35, %v629_v61 }
 0x36d   : > { %v236_v0 = vsub.f32 %v1582_v40, %v220_v47  ;;  %v266_v10 = vadd.f32 %v265_v5, %v251_v3  ;;  %v1220_v3 = vpack.c.bf16 (%p188_p0), %v614_v63, %v613_v39  ;;  %v677_v5 = vld [vmem:[%s2186_s4 + $0x200] sm:$0xff] (%p188_p0) }
 0x36e   :  { %1219 = vmatprep.subr.bf16.mxu1 (%p188_p0), %v1218_v62  ;;  %v621_v39 = vld [vmem:[%s2186_s4 + $0x40] sm:$0xff] (%p188_p0)  ;;  %v622_v62 = vld [vmem:[%s2186_s4 + $0x48] sm:$0xff] (%p188_p0) }
 0x36f   : > { %v252_v6 = vand.u32 2147483647, %v236_v0  ;;  %v693_v0 = vld [vmem:[%s2186_s4 + $0x280] sm:$0xff] (%p188_p0)  ;;  %1221 = vmatpush3.bf16.msra.mxu1 (%p188_p0), %v1220_v3  ;;  %v640_v3 = vld [vmem:[%s2186_s4 + $0xd8] sm:$0xff] (%p188_p0) }
 0x370   : > { %v221_v48 = vpop.trf.xlu0  ;;  %v685_v63 = vld [vmem:[%s2186_s4 + $0x240] sm:$0xff] (%p188_p0) }
 0x371   : > { %v237_v4 = vsub.f32 %v1582_v40, %v221_v48  ;;  %v267_v13 = vadd.f32 %v266_v10, %v252_v6  ;;  %v678_v6 = vld [vmem:[%s2186_s4 + $0x208] sm:$0xff] (%p188_p0) }
 0x372   :  { %v1284_v10 = vpack.c.bf16 (%p188_p0), %v678_v6, %v677_v5  ;;  %v704_v5 = vld [vmem:[%s2186_s4 + $0x2d8] sm:$0xff] (%p188_p0)  ;;  %v1236_v6 = vpack.c.bf16 (%p188_p0), %v622_v62, %v621_v39 }
 0x373   : > { %v253_v11 = vand.u32 2147483647, %v237_v4 }
 0x374   : > { %v222_v52 = vpop.trf.xlu0 }
 0x375   : > { %v238_v7 = vsub.f32 %v1582_v40, %v222_v52  ;;  %v268_v17 = vadd.f32 %v267_v13, %v253_v11  ;;  %v632_v11 = vld [vmem:[%s2186_s4 + $0x98] sm:$0xff] (%p188_p0) }
 0x376   :  { %v616_v13 = vld [vmem:[%s2186_s4 + $0x18] sm:$0xff] (%p188_p0) }
 0x377   : > { %v254_v14 = vand.u32 2147483647, %v238_v7  ;;  %v631_v7 = vld [vmem:[%s2186_s4 + $0x90] sm:$0xff] (%p188_p0) }
 0x378   : > { %v223_v58 = vpop.trf.xlu0 }
 0x379   : > { %v239_v12 = vsub.f32 %v1582_v40, %v223_v58  ;;  %v269_v20 = vadd.f32 %v268_v17, %v254_v14  ;;  %v695_v17 = vld [vmem:[%s2186_s4 + $0x290] sm:$0xff] (%p188_p0) }
 0x37b   : > { %v255_v18 = vand.u32 2147483647, %v239_v12  ;;  %v615_v12 = vld [vmem:[%s2186_s4 + $0x10] sm:$0xff] (%p188_p0) }
 0x37c   : > { %v224_v1 = vpop.trf.xlu0 }
 0x37d   : > { %v240_v15 = vsub.f32 %v1582_v40, %v224_v1  ;;  %v270_v24 = vadd.f32 %v269_v20, %v255_v18  ;;  %v694_v1 = vld [vmem:[%s2186_s4 + $0x288] sm:$0xff] (%p188_p0)  ;;  %v696_v18 = vld [vmem:[%s2186_s4 + $0x298] sm:$0xff] (%p188_p0) }
 0x37e   :  { %v1282_v4 = vpack.c.bf16 (%p188_p0), %v694_v1, %v693_v0  ;;  %v686_v1 = vld [vmem:[%s2186_s4 + $0x248] sm:$0xff] (%p188_p0) }
 0x37f   : > { %v256_v21 = vand.u32 2147483647, %v240_v15  ;;  %v1222_v15 = vpack.c.bf16 (%p188_p0), %v632_v11, %v631_v7  ;;  %v1300_v7 = vpack.c.bf16 (%p188_p0), %v686_v1, %v685_v63  ;;  %v624_v11 = vld [vmem:[%s2186_s4 + $0x58] sm:$0xff] (%p188_p0) }
 0x380   : > { %v225_v9 = vpop.trf.xlu0  ;;  %1283 = vmatprep.subr.bf16.mxu0 (%p188_p0), %v1282_v4  ;;  %v703_v4 = vld [vmem:[%s2186_s4 + $0x2d0] sm:$0xff] (%p188_p0) }
 0x381   : > { %v241_v19 = vsub.f32 %v1582_v40, %v225_v9  ;;  %v271_v27 = vadd.f32 %v270_v24, %v256_v21  ;;  %1285 = vmatpush3.bf16.msra.mxu0 (%p188_p0), %v1284_v10  ;;  %v1286_v21 = vpack.c.bf16 (%p188_p0), %v696_v18, %v695_v17  ;;  %v634_v24 = vld [vmem:[%s2186_s4 + $0xa8] sm:$0xff] (%p188_p0)  ;;  %1223 = vmatprep.subr.bf16.mxu1 (%p188_p0), %v1222_v15  ;;  %v623_v10 = vld [vmem:[%s2186_s4 + $0x50] sm:$0xff] (%p188_p0)  ;;  %v688_v15 = vld [vmem:[%s2186_s4 + $0x258] sm:$0xff] (%p188_p0) }
 0x382   :  { %v642_v17 = vld [vmem:[%s2186_s4 + $0xe8] sm:$0xff] (%p188_p0)  ;;  %v705_v18 = vld [vmem:[%s2186_s4 + $0x2e0] sm:$0xff] (%p188_p0) }
 0x383   : > { %v257_v25 = vand.u32 2147483647, %v241_v19  ;;  %v679_v19 = vld [vmem:[%s2186_s4 + $0x210] sm:$0xff] (%p188_p0)  ;;  %1287 = vmatprep.subr.bf16.mxu0 (%p188_p0), %v1286_v21  ;;  %v1240_v21 = vpack.c.bf16 (%p188_p0), %v624_v11, %v623_v10  ;;  %v289_v11 = vmul.f32 (%p188_p0), 130.0, %v1566_v8 }
 0x384   : > { %v226_v16 = vpop.trf.xlu0 }
 0x385   : > { %v242_v22 = vsub.f32 %v1582_v40, %v226_v16  ;;  %v272_v30 = vadd.f32 %v271_v27, %v257_v25  ;;  %v1224_v16 = vpack.c.bf16 (%p188_p0), %v616_v13, %v615_v12  ;;  %v617_v27 = vld [vmem:[%s2186_s4 + $0x20] sm:$0xff] (%p188_p0)  ;;  %v687_v12 = vld [vmem:[%s2186_s4 + $0x250] sm:$0xff] (%p188_p0)  ;;  %v1302_v13 = vpack.c.bf16 (%p188_p0), %v704_v5, %v703_v4 }
 0x387   : > { %v258_v28 = vand.u32 2147483647, %v242_v22  ;;  %v680_v22 = vld [vmem:[%s2186_s4 + $0x218] sm:$0xff] (%p188_p0)  ;;  %1225 = vmatpush3.bf16.msra.mxu1 (%p188_p0), %v1224_v16  ;;  %v641_v16 = vld [vmem:[%s2186_s4 + $0xe0] sm:$0xff] (%p188_p0) }
 0x388   : > { %v227_v23 = vpop.trf.xlu0  ;;  %v1288_v25 = vpack.c.bf16 (%p188_p0), %v680_v22, %v679_v19  ;;  %v706_v19 = vld [vmem:[%s2186_s4 + $0x2e8] sm:$0xff] (%p188_p0)  ;;  %v625_v22 = vld [vmem:[%s2186_s4 + $0x60] sm:$0xff] (%p188_p0) }
 0x389   : > { %v243_v26 = vsub.f32 %v1582_v40, %v227_v23  ;;  %v273_v33 = vadd.f32 %v272_v30, %v258_v28  ;;  %v633_v23 = vld [vmem:[%s2186_s4 + $0xa0] sm:$0xff] (%p188_p0)  ;;  %v618_v28 = vld [vmem:[%s2186_s4 + $0x28] sm:$0xff] (%p188_p0) }
 0x38a   :  { %v698_v30 = vld [vmem:[%s2186_s4 + $0x2a8] sm:$0xff] (%p188_p0)  ;;  %1289 = vmatpush3.bf16.msra.mxu0 (%p188_p0), %v1288_v25  ;;  %v1304_v25 = vpack.c.bf16 (%p188_p0), %v688_v15, %v687_v12 }
 0x38b   : > { %v259_v31 = vand.u32 2147483647, %v243_v26  ;;  %v1226_v26 = vpack.c.bf16 (%p188_p0), %v634_v24, %v633_v23  ;;  %v626_v23 = vld [vmem:[%s2186_s4 + $0x68] sm:$0xff] (%p188_p0)  ;;  %v1819_v24 = vmax.f32 (%p188_p0), %v1572_v36, 0.0  ;;  %v1306_v36 = vpack.c.bf16 (%p188_p0), %v706_v19, %v705_v18 }
 0x38c   : > { %v228_v29 = vpop.trf.xlu0 }
 0x38d   : > { %v244_v32 = vsub.f32 %v1582_v40, %v228_v29  ;;  %v274_v38 = vadd.f32 %v273_v33, %v259_v31  ;;  %v697_v29 = vld [vmem:[%s2186_s4 + $0x2a0] sm:$0xff] (%p188_p0)  ;;  %v1228_v33 = vpack.c.bf16 (%p188_p0), %v618_v28, %v617_v27  ;;  %1227 = vmatprep.subr.bf16.mxu1 (%p188_p0), %v1226_v26  ;;  %v1242_v26 = vpack.c.bf16 (%p188_p0), %v642_v17, %v641_v16 }
 0x38e   :  { %v681_v31 = vld [vmem:[%s2186_s4 + $0x220] sm:$0xff] (%p188_p0) }
 0x38f   : > { %v260_v34 = vand.u32 2147483647, %v244_v32  ;;  %v682_v32 = vld [vmem:[%s2186_s4 + $0x228] sm:$0xff] (%p188_p0)  ;;  %1229 = vmatpush3.bf16.msra.mxu1 (%p188_p0), %v1228_v33  ;;  %v689_v27 = vld [vmem:[%s2186_s4 + $0x260] sm:$0xff] (%p188_p0) }
 0x390   : > { %v229_v37 = vpop.trf.xlu0  ;;  %v1827_v28 = vld [vmem:[%s2184_s2 + $0x3] ss:$4 sm:$0xff] (%p188_p0) }
 0x391   : > { %v245_v41 = vsub.f32 %v1582_v40, %v229_v37  ;;  %v275_v42 = vadd.f32 %v274_v38, %v260_v34  ;;  %v298_v40 = vlaneseq (%p188_p0)  ;;  %v1290_v34 = vpack.c.bf16 (%p188_p0), %v698_v30, %v697_v29  ;;  %v635_v37 = vld [vmem:[%s2186_s4 + $0xb0] sm:$0xff] (%p188_p0)  ;;  %v636_v38 = vld [vmem:[%s2186_s4 + $0xb8] sm:$0xff] (%p188_p0)  ;;  %v1832_v29 = vld [vmem:[%s2185_s3] sm:$0xff] (%p188_p0) }
 0x392   :  { %v690_v30 = vld [vmem:[%s2186_s4 + $0x268] sm:$0xff] (%p188_p0) }
 0x393   : > { %v261_v43 = vand.u32 2147483647, %v245_v41  ;;  %v1620_v52 = vshrl.u32 (%p188_p0), %v298_v40, 7  ;;  %v619_v41 = vld [vmem:[%s2186_s4 + $0x30] sm:$0xff] (%p188_p0)  ;;  %1291 = vmatprep.subr.bf16.mxu0 (%p188_p0), %v1290_v34 }
 0x394   :  { %v707_v34 = vld [vmem:[%s2186_s4 + $0x2f0] sm:$0xff] (%p188_p0) }
 0x395   : > { %v276_v44 = vadd.f32 %v275_v42, %v261_v43  ;;  %v1623_v53 = vsub.s32 (%p188_p0), 6, %v1620_v52  ;;  %v1292_v42 = vpack.c.bf16 (%p188_p0), %v682_v32, %v681_v31  ;;  %v1230_v43 = vpack.c.bf16 (%p188_p0), %v636_v38, %v635_v37  ;;  %v643_v31 = vld [vmem:[%s2186_s4 + $0xf0] sm:$0xff] (%p188_p0)  ;;  %v644_v32 = vld [vmem:[%s2186_s4 + $0xf8] sm:$0xff] (%p188_p0) }
 0x396   :  { %v708_v37 = vld [vmem:[%s2186_s4 + $0x2f8] sm:$0xff] (%p188_p0)  ;;  %v1881_v39 = vsub.s32 (%p188_p0), 0, %v1620_v52  ;;  %v1891_v1 = vsub.s32 (%p188_p0), 3, %v1620_v52 }
 0x397   : > { %v277_v45 = vrot.slane %v276_v44, 4  ;;  %v325_v58 = vrot.slane (%p188_p0), %v1628_v54, %v1623_v53  ;;  %v376_v59 = vrot.slane (%p188_p0), %v1633_v55, %v1623_v53  ;;  %v435_v14 = vrot.slane (%p188_p0), %v1648_v60, %v1623_v53  ;;  %1293 = vmatpush3.bf16.msra.mxu0 (%p188_p0), %v1292_v42  ;;  %1231 = vmatprep.subr.bf16.mxu1 (%p188_p0), %v1230_v43 }
 0x398   :  { %v494_v33 = vrot.slane (%p188_p0), %v1827_v28, %v1623_v53  ;;  %v552_v38 = vrot.slane (%p188_p0), %v1832_v29, %v1623_v53  ;;  %v1308_v43 = vpack.c.bf16 (%p188_p0), %v690_v30, %v689_v27  ;;  %v301_v4 = vrot.slane (%p188_p0), %v1628_v54, %v1881_v39 }
 0x399   : > { %v278_v46 = vadd.f32 %v277_v45, %v276_v44  ;;  %v344_v2 = vmul.f32 (%p188_p0), %v325_v58, %v1636_v56  ;;  %v395_v9 = vmul.f32 (%p188_p0), %v376_v59, %v1639_v57  ;;  %v620_v44 = vld [vmem:[%s2186_s4 + $0x38] sm:$0xff] (%p188_p0)  ;;  %v699_v45 = vld [vmem:[%s2186_s4 + $0x2b0] sm:$0xff] (%p188_p0)  ;;  %v701_v58 = vld [vmem:[%s2186_s4 + $0x2c0] sm:$0xff] (%p188_p0)  ;;  %v352_v5 = vrot.slane (%p188_p0), %v1633_v55, %v1881_v39 }
 0x39a   :  { %v1232_v40 = vpack.c.bf16 (%p188_p0), %v620_v44, %v619_v41  ;;  %v702_v59 = vld [vmem:[%s2186_s4 + $0x2c8] sm:$0xff] (%p188_p0)  ;;  %v1244_v41 = vpack.c.bf16 (%p188_p0), %v626_v23, %v625_v22  ;;  %v1854_v42 = vmul.f32 (%p188_p0), %v494_v33, %v1819_v24  ;;  %v1246_v44 = vpack.c.bf16 (%p188_p0), %v644_v32, %v643_v31 }
 0x39b   : > { %v279_v47 = vrot.slane %v278_v46, 2  ;;  %v1699_v20 = vadd.f32 (%p188_p0), %v395_v9, %v344_v2  ;;  %v1298_v0 = vpack.c.bf16 (%p188_p0), %v702_v59, %v701_v58  ;;  %v639_v2 = vld [vmem:[%s2186_s4 + $0xd0] sm:$0xff] (%p188_p0)  ;;  %v662_v58 = vld [vmem:[%s2186_s4 + $0x188] sm:$0xff] (%p188_p0)  ;;  %v313_v12 = vrot.slane (%p188_p0), %v1628_v54, %v1891_v1 }
 0x39c   :  { %1233 = vmatpush3.bf16.msra.mxu1 (%p188_p0), %v1232_v40  ;;  %v1238_v9 = vpack.c.bf16 (%p188_p0), %v640_v3, %v639_v2  ;;  %v661_v40 = vld [vmem:[%s2186_s4 + $0x180] sm:$0xff] (%p188_p0)  ;;  %v338_v19 = vmul.f32 (%p188_p0), %v301_v4, %v1636_v56 }
 0x39d   : > { %v280_v48 = vadd.f32 %v279_v47, %v278_v46  ;;  %190 = sbr.rel (!%p188_p0) target bundleno = 722 (0x2d2), region = 52  ;;  %v700_v46 = vld [vmem:[%s2186_s4 + $0x2b8] sm:$0xff] (%p188_p0)  ;;  %v1250_v59 = vpack.c.bf16 (%p188_p0), %v662_v58, %v661_v40 }
 0x39e   :  { %v1294_v47 = vpack.c.bf16 (%p188_p0), %v700_v46, %v699_v45  ;;  %v627_v45 = vld [vmem:[%s2186_s4 + $0x70] sm:$0xff] (%p188_p0)  ;;  %v628_v46 = vld [vmem:[%s2186_s4 + $0x78] sm:$0xff] (%p188_p0) }
 0x39f   : > { %v281_v49 = vrot.slane %v280_v48, 1 }
 0x3a0   :  { %1295 = vmatprep.subr.bf16.mxu0 (%p188_p0), %v1294_v47  ;;  %v1310_v47 = vpack.c.bf16 (%p188_p0), %v708_v37, %v707_v34  ;;  %v470_v34 = vrot.slane (%p188_p0), %v1827_v28, %v1881_v39 }
 0x3a1   : > { %v282_v50 = vadd.f32 %v281_v49, %v280_v48  ;;  %v683_v48 = vld [vmem:[%s2186_s4 + $0x230] sm:$0xff] (%p188_p0)  ;;  %v684_v49 = vld [vmem:[%s2186_s4 + $0x238] sm:$0xff] (%p188_p0) }
 0x3a2   :  { %v1296_v61 = vpack.c.bf16 (%p188_p0), %v684_v49, %v683_v48  ;;  %v691_v48 = vld [vmem:[%s2186_s4 + $0x270] sm:$0xff] (%p188_p0)  ;;  %v692_v49 = vld [vmem:[%s2186_s4 + $0x278] sm:$0xff] (%p188_p0) }
 0x3a3   : > { %284 = vst [vmem:[%s283_s27] sm:$0x1] %v282_v50  ;;  %v637_v50 = vld [vmem:[%s2186_s4 + $0xc0] sm:$0xff] (%p188_p0) }
 0x3a4   :  { %1297 = vmatpush3.bf16.msra.mxu0 %v1296_v61  ;;  %v1875_v61 = vsub.s32 1, %v1620_v52 }
 0x3a5   :  { %1299 = vmatprep.subr.bf16.mxu0 %v1298_v0  ;;  %v1888_v0 = vsub.s32 4, %v1620_v52 }
 0x3a6   :  { %v305_v62 = vrot.slane %v1628_v54, %v1875_v61  ;;  %v356_v63 = vrot.slane %v1633_v55, %v1875_v61  ;;  %v415_v8 = vrot.slane %v1648_v60, %v1875_v61  ;;  %v474_v27 = vrot.slane %v1827_v28, %v1875_v61 }
 0x3a7   :  { %v368_v10 = vrot.slane %v1633_v55, %v1888_v0 }
 0x3a8   :  { %1301 = vmatpush3.bf16.msra.mxu0 %v1300_v7  ;;  %v390_v7 = vmul.f32 %v356_v63, %v1639_v57  ;;  %v528_v63 = vrot.slane %v1832_v29, %v1881_v39 }
 0x3a9   :  { %1303 = vmatprep.subr.bf16.mxu0 %v1302_v13  ;;  %v364_v13 = vrot.slane %v1633_v55, %v1891_v1 }
 0x3aa   :  { %v285_v51 = vld [vmem:[#allocation3] sm:$0xff] }
 0x3ab   :  { %286 = vadd.xlane.f32.xlu0 %v285_v51  ;;  %v638_v51 = vld [vmem:[%s2186_s4 + $0xc8] sm:$0xff]  ;;  %v392_v30 = vmul.f32 %v364_v13, %v1639_v57 }
 0x3ac   :  { %v1234_v35 = vpack.c.bf16 %v638_v51, %v637_v50  ;;  %1305 = vmatpush3.bf16.msra.mxu0 %v1304_v25  ;;  %v1248_v50 = vpack.c.bf16 %v628_v46, %v627_v45  ;;  %v1312_v51 = vpack.c.bf16 %v692_v49, %v691_v48  ;;  %v393_v25 = vmul.f32 %v368_v10, %v1639_v57 }
 0x3ad   :  { %1307 = vmatprep.subr.bf16.mxu0 %v1306_v36  ;;  %v341_v36 = vmul.f32 %v313_v12, %v1636_v56  ;;  %v427_v46 = vrot.slane %v1648_v60, %v1888_v0  ;;  %v482_v48 = vrot.slane %v1827_v28, %v1891_v1 }
 0x3ae   :  { %1235 = vmatprep.subr.bf16.mxu1 %v1234_v35  ;;  %v1878_v35 = vsub.s32 5, %v1620_v52 }
 0x3af   :  { %1237 = vmatpush3.bf16.msra.mxu1 %v1236_v6  ;;  %v339_v6 = vmul.f32 %v305_v62, %v1636_v56  ;;  %v400_v40 = vadd.f32 %v392_v30, %v341_v36  ;;  %v507_v62 = vmul.f32 %v470_v34, %v1819_v24 }
 0x3b0   :  { %1239 = vmatprep.subr.bf16.mxu1 %v1238_v9  ;;  %1309 = vmatpush3.bf16.msra.mxu0 %v1308_v43  ;;  %v321_v2 = vrot.slane %v1628_v54, %v1878_v35  ;;  %v372_v3 = vrot.slane %v1633_v55, %v1878_v35  ;;  %v317_v9 = vrot.slane %v1628_v54, %v1888_v0 }
 0x3b1   :  { %1311 = vmatprep.subr.bf16.mxu0 %v1310_v47  ;;  %v398_v22 = vadd.f32 %v390_v7, %v339_v6  ;;  %v431_v32 = vrot.slane %v1648_v60, %v1878_v35  ;;  %v490_v33 = vrot.slane %v1827_v28, %v1878_v35  ;;  %v411_v43 = vrot.slane %v1648_v60, %v1881_v39 }
 0x3b2   :  { %v343_v16 = vmul.f32 %v321_v2, %v1636_v56  ;;  %v394_v17 = vmul.f32 %v372_v3, %v1639_v57  ;;  %v342_v23 = vmul.f32 %v317_v9, %v1636_v56  ;;  %v423_v47 = vrot.slane %v1648_v60, %v1891_v1 }
 0x3b3   :  { %1241 = vmatpush3.bf16.msra.mxu1 %v1240_v21  ;;  %v389_v21 = vmul.f32 %v352_v5, %v1639_v57  ;;  %v512_v58 = vmul.f32 %v490_v33, %v1819_v24  ;;  %v510_v7 = vmul.f32 %v482_v48, %v1819_v24 }
 0x3b4   :  { %1243 = vmatprep.subr.bf16.mxu1 %v1242_v26  ;;  %1313 = vmatpush3.bf16.msra.mxu0 %v1312_v51  ;;  %v402_v31 = vadd.f32 %v394_v17, %v343_v16  ;;  %v401_v45 = vadd.f32 %v393_v25, %v342_v23  ;;  %v532_v51 = vrot.slane %v1832_v29, %v1875_v61 }
 0x3b7   :  { %1245 = vmatpush3.bf16.msra.mxu1 %v1244_v41  ;;  %v397_v41 = vadd.f32 %v389_v21, %v338_v19 }
 0x3b8   :  { %1247 = vmatprep.subr.bf16.mxu1 %v1246_v44  ;;  %v486_v44 = vrot.slane %v1827_v28, %v1888_v0 }
 0x3ba   :  { %v511_v4 = vmul.f32 %v486_v44, %v1819_v24 }
 0x3bb   :  { %1249 = vmatpush3.bf16.msra.mxu1 %v1248_v50  ;;  %v508_v50 = vmul.f32 %v474_v27, %v1819_v24  ;;  %v308_v27 = vsub.s32 2, %v1620_v52 }
 0x3bc   :  { %1251 = vmatprep.subr.bf16.mxu1 %v1250_v59  ;;  %v548_v59 = vrot.slane %v1832_v29, %v1878_v35 }
 0x3bd   :  { %v360_v53 = vrot.slane %v1633_v55, %v308_v27 }
 0x438   :  { %v287_v15 = vpop.xlane.xlu0 %286 }
 0x439   :  { %v288_v18 = vmul.f32 0.5, %v287_v15  ;;  %v540_v15 = vrot.slane %v1832_v29, %v1891_v1 }
 0x43b   :  { %v290_v26 = vsub.f32 %v288_v18, %v289_v11  ;;  %v544_v11 = vrot.slane %v1832_v29, %v1888_v0 }
 0x43d   :  { %v291_v37 = vmul.f32 6.1035156e-05, %v290_v26 }
 0x43f   :  { %v1940_v49 = vmax.f32 %v291_v37, 0.0  ;;  %v309_v37 = vrot.slane %v1628_v54, %v308_v27 }
 0x441   :  { %v449_v2 = vmul.f32 %v415_v8, %v1940_v49  ;;  %v454_v3 = vmul.f32 %v435_v14, %v1940_v49  ;;  %v453_v61 = vmul.f32 %v431_v32, %v1940_v49  ;;  %v448_v5 = vmul.f32 %v411_v43, %v1940_v49 }
 0x442   :  { %v452_v35 = vmul.f32 %v427_v46, %v1940_v49  ;;  %v451_v6 = vmul.f32 %v423_v47, %v1940_v49  ;;  %v340_v46 = vmul.f32 %v309_v37, %v1636_v56  ;;  %v419_v47 = vrot.slane %v1648_v60, %v308_v27  ;;  %v668_v37 = vld [vmem:[%s2186_s4 + $0x1b8] sm:$0xff] }
 0x443   :  { %v457_v39 = vadd.f32 %v449_v2, %v398_v22  ;;  %v462_v9 = vadd.f32 %v454_v3, %v1699_v20  ;;  %v461_v10 = vadd.f32 %v453_v61, %v402_v31  ;;  %v456_v14 = vadd.f32 %v448_v5, %v397_v41 }
 0x444   :  { %v460_v12 = vadd.f32 %v452_v35, %v401_v45  ;;  %v459_v13 = vadd.f32 %v451_v6, %v400_v40  ;;  %v328_v31 = vsub.s32 7, %v1620_v52  ;;  %v391_v52 = vmul.f32 %v360_v53, %v1639_v57 }
 0x445   :  { %v516_v16 = vadd.f32 %v508_v50, %v457_v39  ;;  %v521_v17 = vadd.f32 %v1854_v42, %v462_v9  ;;  %v520_v18 = vadd.f32 %v512_v58, %v461_v10  ;;  %v515_v19 = vadd.f32 %v507_v62, %v456_v14 }
 0x446   :  { %v519_v21 = vadd.f32 %v511_v4, %v460_v12  ;;  %v518_v8 = vadd.f32 %v510_v7, %v459_v13  ;;  %v329_v43 = vrot.slane %v1628_v54, %v328_v31  ;;  %v380_v44 = vrot.slane %v1633_v55, %v328_v31  ;;  %v646_v13 = vld [vmem:[%s2186_s4 + $0x108] sm:$0xff] }
 0x447   :  { %v566_v22 = vadd.f32 %v532_v51, %v516_v16  ;;  %v1971_v20 = vadd.f32 %v552_v38, %v521_v17  ;;  %v570_v0 = vadd.f32 %v548_v59, %v520_v18  ;;  %v565_v23 = vadd.f32 %v528_v63, %v515_v19  ;;  %v663_v16 = vld [vmem:[%s2186_s4 + $0x190] sm:$0xff] }
 0x448   :  { %v569_v25 = vadd.f32 %v544_v11, %v519_v21  ;;  %v568_v26 = vadd.f32 %v540_v15, %v518_v8  ;;  %v345_v48 = vmul.f32 %v329_v43, %v1636_v56  ;;  %v396_v50 = vmul.f32 %v380_v44, %v1639_v57  ;;  %v652_v43 = vld [vmem:[%s2186_s4 + $0x138] sm:$0xff]  ;;  %v669_v44 = vld [vmem:[%s2186_s4 + $0x1c0] sm:$0xff] }
 0x449   :  { %v574_v1 = vsub.f32 0.0, %v566_v22  ;;  %v578_v36 = vsub.f32 0.0, %v570_v0  ;;  %v573_v30 = vsub.f32 0.0, %v565_v23  ;;  %v439_v51 = vrot.slane %v1648_v60, %v328_v31  ;;  %v647_v22 = vld [vmem:[%s2186_s4 + $0x110] sm:$0xff]  ;;  %v648_v0 = vld [vmem:[%s2186_s4 + $0x118] sm:$0xff] }
 0x44a   :  { %v577_v42 = vsub.f32 0.0, %v569_v25  ;;  %v576_v33 = vsub.f32 0.0, %v568_v26  ;;  %v399_v54 = vadd.f32 %v391_v52, %v340_v46  ;;  %v450_v55 = vmul.f32 %v419_v47, %v1940_v49  ;;  %v665_v25 = vld [vmem:[%s2186_s4 + $0x1a0] sm:$0xff]  ;;  %v666_v26 = vld [vmem:[%s2186_s4 + $0x1a8] sm:$0xff] }
 0x44b   :  { %v583_v32 = vmul.f32 1.442695, %v574_v1  ;;  %v591_v34 = vmul.f32 1.442695, %v578_v36  ;;  %v581_v38 = vmul.f32 1.442695, %v573_v30  ;;  %v478_v40 = vrot.slane %v1827_v28, %v308_v27 }
 0x44c   :  { %v589_v41 = vmul.f32 1.442695, %v577_v42  ;;  %v587_v45 = vmul.f32 1.442695, %v576_v33  ;;  %v404_v58 = vadd.f32 %v396_v50, %v345_v48  ;;  %v455_v59 = vmul.f32 %v439_v51, %v1940_v49  ;;  %v650_v33 = vld [vmem:[%s2186_s4 + $0x128] sm:$0xff]  ;;  %v653_v47 = vld [vmem:[%s2186_s4 + $0x140] sm:$0xff] }
 0x44d   :  { %1370 = vpow2.f32 %v583_v32  ;;  %v498_v62 = vrot.slane %v1827_v28, %v328_v31  ;;  %v458_v3 = vadd.f32 %v450_v55, %v399_v54  ;;  %v509_v56 = vmul.f32 %v478_v40, %v1819_v24  ;;  %v649_v32 = vld [vmem:[%s2186_s4 + $0x120] sm:$0xff]  ;;  %v654_v48 = vld [vmem:[%s2186_s4 + $0x148] sm:$0xff]  ;;  %v671_v50 = vld [vmem:[%s2186_s4 + $0x1d0] sm:$0xff] }
 0x44e   :  { %1372 = vpow2.f32 %v591_v34  ;;  %v463_v57 = vadd.f32 %v455_v59, %v404_v58  ;;  %v536_v49 = vrot.slane %v1832_v29, %v308_v27  ;;  %v556_v11 = vrot.slane %v1832_v29, %v328_v31  ;;  %v664_v29 = vld [vmem:[%s2186_s4 + $0x198] sm:$0xff]  ;;  %v667_v34 = vld [vmem:[%s2186_s4 + $0x1b0] sm:$0xff] }
 0x44f   :  { %1374 = vpow2.f32 %v581_v38  ;;  %v514_v60 = vmul.f32 %v498_v62, %v1819_v24  ;;  %v517_v39 = vadd.f32 %v509_v56, %v458_v3  ;;  %v645_v24 = vld [vmem:[%s2186_s4 + $0x100] sm:$0xff]  ;;  %v1254_v8 = vpack.c.bf16 %v664_v29, %v663_v16  ;;  %v672_v51 = vld [vmem:[%s2186_s4 + $0x1d8] sm:$0xff]  ;;  %v655_v58 = vld [vmem:[%s2186_s4 + $0x150] sm:$0xff] }
 0x450   :  { %1376 = vpow2.f32 %v589_v41  ;;  %v1252_v18 = vpack.c.bf16 %v646_v13, %v645_v24  ;;  %v1256_v30 = vpack.c.bf16 %v648_v0, %v647_v22  ;;  %v1258_v31 = vpack.c.bf16 %v666_v26, %v665_v25  ;;  %v651_v41 = vld [vmem:[%s2186_s4 + $0x130] sm:$0xff]  ;;  %v656_v59 = vld [vmem:[%s2186_s4 + $0x158] sm:$0xff]  ;;  %v713_v25 = vld [vmem:[%s2186_s4 + $0x320] sm:$0xff] }
 0x451   :  { %1378 = vpow2.f32 %v587_v45  ;;  %v522_v10 = vadd.f32 %v514_v60, %v463_v57  ;;  %v567_v14 = vadd.f32 %v536_v49, %v517_v39  ;;  %v1260_v53 = vpack.c.bf16 %v650_v33, %v649_v32  ;;  %v670_v45 = vld [vmem:[%s2186_s4 + $0x1c8] sm:$0xff]  ;;  %v657_v57 = vld [vmem:[%s2186_s4 + $0x160] sm:$0xff]  ;;  %v659_v39 = vld [vmem:[%s2186_s4 + $0x170] sm:$0xff] }
 0x452   :  { %v1262_v38 = vpack.c.bf16 %v668_v37, %v667_v34  ;;  %v1264_v46 = vpack.c.bf16 %v652_v43, %v651_v41  ;;  %v1266_v52 = vpack.c.bf16 %v670_v45, %v669_v44  ;;  %v1268_v54 = vpack.c.bf16 %v654_v48, %v653_v47  ;;  %v658_v60 = vld [vmem:[%s2186_s4 + $0x168] sm:$0xff]  ;;  %v660_v49 = vld [vmem:[%s2186_s4 + $0x178] sm:$0xff]  ;;  %v727_v24 = vld [vmem:[%s2186_s4 + $0x390] sm:$0xff] }
 0x453   :  { %v572_v12 = vadd.f32 %v556_v11, %v522_v10  ;;  %v575_v17 = vsub.f32 0.0, %v567_v14  ;;  %v1270_v40 = vpack.c.bf16 %v672_v51, %v671_v50  ;;  %v1272_v3 = vpack.c.bf16 %v656_v59, %v655_v58  ;;  %v709_v14 = vld [vmem:[%s2186_s4 + $0x300] sm:$0xff]  ;;  %v728_v13 = vld [vmem:[%s2186_s4 + $0x398] sm:$0xff]  ;;  %v714_v26 = vld [vmem:[%s2186_s4 + $0x328] sm:$0xff] }
 0x454   :  { %v1280_v10 = vpack.c.bf16 %v660_v49, %v659_v39  ;;  %v1318_v29 = vpack.c.bf16 %v728_v13, %v727_v24  ;;  %v733_v32 = vld [vmem:[%s2186_s4 + $0x3c0] sm:$0xff]  ;;  %v734_v33 = vld [vmem:[%s2186_s4 + $0x3c8] sm:$0xff]  ;;  %v735_v41 = vld [vmem:[%s2186_s4 + $0x3d0] sm:$0xff] }
 0x455   :  { %v580_v19 = vsub.f32 0.0, %v572_v12  ;;  %v585_v1 = vmul.f32 1.442695, %v575_v17  ;;  %v710_v12 = vld [vmem:[%s2186_s4 + $0x308] sm:$0xff]  ;;  %v711_v17 = vld [vmem:[%s2186_s4 + $0x310] sm:$0xff]  ;;  %v1330_v37 = vpack.c.bf16 %v734_v33, %v733_v32  ;;  %v736_v43 = vld [vmem:[%s2186_s4 + $0x3d8] sm:$0xff] }
 0x456   :  { %v1316_v16 = vpack.c.bf16 %v710_v12, %v709_v14  ;;  %v720_v47 = vld [vmem:[%s2186_s4 + $0x358] sm:$0xff]  ;;  %v737_v48 = vld [vmem:[%s2186_s4 + $0x3e0] sm:$0xff]  ;;  %v738_v50 = vld [vmem:[%s2186_s4 + $0x3e8] sm:$0xff] }
 0x457   :  { %v1371_v63 = vpop.eup %1370  ;;  %v595_v42 = vmul.f32 1.442695, %v580_v19  ;;  %v722_v58 = vld [vmem:[%s2186_s4 + $0x368] sm:$0xff]  ;;  %v739_v59 = vld [vmem:[%s2186_s4 + $0x3f0] sm:$0xff] }
 0x458   :  { %v598_v2 = vadd.f32 1.0, %v1371_v63  ;;  %v1373_v61 = vpop.eup %1372  ;;  %v673_v63 = vld [vmem:[%s2186_s4 + $0x1e0] sm:$0xff] }
 0x459   :  { %v1375_v4 = vpop.eup %1374  ;;  %v602_v5 = vadd.f32 1.0, %v1373_v61 }
 0x45a   :  { %1380 = vrcp.f32 %v598_v2  ;;  %v1377_v35 = vpop.eup %1376  ;;  %v597_v6 = vadd.f32 1.0, %v1375_v4  ;;  %v674_v2 = vld [vmem:[%s2186_s4 + $0x1e8] sm:$0xff] }
 0x45b   :  { %v1379_v7 = vpop.eup %1378  ;;  %1382 = vrcp.f32 %v602_v5  ;;  %v601_v28 = vadd.f32 1.0, %v1377_v35  ;;  %v1274_v61 = vpack.c.bf16 %v674_v2, %v673_v63  ;;  %v675_v5 = vld [vmem:[%s2186_s4 + $0x1f0] sm:$0xff]  ;;  %v676_v35 = vld [vmem:[%s2186_s4 + $0x1f8] sm:$0xff] }
 0x45c   :  { %1384 = vrcp.f32 %v597_v6  ;;  %v600_v9 = vadd.f32 1.0, %v1379_v7  ;;  %v1276_v6 = vpack.c.bf16 %v658_v60, %v657_v57  ;;  %v1278_v7 = vpack.c.bf16 %v676_v35, %v675_v5 }
 0x45d   :  { %1386 = vrcp.f32 %v601_v28  ;;  %v725_v28 = vld [vmem:[%s2186_s4 + $0x380] sm:$0xff] }
 0x45e   :  { %1388 = vrcp.f32 %v600_v9  ;;  %v726_v9 = vld [vmem:[%s2186_s4 + $0x388] sm:$0xff] }
 0x45f   :  { %1390 = vpow2.f32 %v585_v1  ;;  %v1314_v11 = vpack.c.bf16 %v726_v9, %v725_v28  ;;  %v732_v1 = vld [vmem:[%s2186_s4 + $0x3b8] sm:$0xff] }
 0x460   :  { %1392 = vpow2.f32 %v595_v42  ;;  %v715_v42 = vld [vmem:[%s2186_s4 + $0x330] sm:$0xff] }
 0x464   :  { %v1381_v15 = vpop.eup %1380 }
 0x465   :  { %805 = vmatprep.mubr.f32.mxu1 %v1381_v15  ;;  %v1383_v21 = vpop.eup %1382  ;;  %v579_v15 = vsub.f32 0.0, %v1971_v20  ;;  %v730_v20 = vld [vmem:[%s2186_s4 + $0x3a8] sm:$0xff] }
 0x466   :  { %v1385_v23 = vpop.eup %1384  ;;  %945 = vmatprep.mubr.f32.mxu0 %v1383_v21  ;;  %v729_v21 = vld [vmem:[%s2186_s4 + $0x3a0] sm:$0xff] }
 0x467   :  { %v1387_v27 = vpop.eup %1386  ;;  %806 = vmatmul.mubr.f32.vlgmr.msra.gmra.mrb[0].mxu1 %v1385_v23  ;;  %v593_v22 = vmul.f32 1.442695, %v579_v15  ;;  %v1322_v23 = vpack.c.bf16 %v730_v20, %v729_v21 }
 0x468   :  { %v1389_v36 = vpop.eup %1388  ;;  %1253 = vmatpush3.bf16.msra.mxu1 %v1252_v18  ;;  %946 = vmatmul.mubr.f32.vlgmr.msra.gmra.mrb[2].mxu0 %v1387_v27  ;;  %v712_v18 = vld [vmem:[%s2186_s4 + $0x318] sm:$0xff]  ;;  %v731_v27 = vld [vmem:[%s2186_s4 + $0x3b0] sm:$0xff] }
 0x469   :  { %875 = vmatprep.mubr.f32.mxu1 %v1389_v36  ;;  %1255 = vmatprep.subr.bf16.mxu1 %v1254_v8  ;;  %v1391_v55 = vpop.eup %1390  ;;  %v1320_v0 = vpack.c.bf16 %v712_v18, %v711_v17  ;;  %v1324_v36 = vpack.c.bf16 %v714_v26, %v713_v25 }
 0x46a   :  { %v1393_v62 = vpop.eup %1392  ;;  %v599_v56 = vadd.f32 1.0, %v1391_v55  ;;  %v1338_v55 = vpack.c.bf16 %v738_v50, %v737_v48 }
 0x46b   :  { %v604_v4 = vadd.f32 1.0, %v1393_v62  ;;  %v740_v62 = vld [vmem:[%s2186_s4 + $0x3f8] sm:$0xff] }
 0x46c   :  { %1257 = vmatpush3.bf16.msra.mxu1 %v1256_v30  ;;  %1394 = vrcp.f32 %v599_v56  ;;  %v1326_v30 = vpack.c.bf16 %v732_v1, %v731_v27  ;;  %v1342_v2 = vpack.c.bf16 %v740_v62, %v739_v59  ;;  %v724_v56 = vld [vmem:[%s2186_s4 + $0x378] sm:$0xff] }
 0x46d   :  { %1259 = vmatprep.subr.bf16.mxu1 %v1258_v31  ;;  %1396 = vrcp.f32 %v604_v4  ;;  %v716_v31 = vld [vmem:[%s2186_s4 + $0x338] sm:$0xff] }
 0x46e   :  { %1398 = vpow2.f32 %v593_v22  ;;  %v1328_v34 = vpack.c.bf16 %v716_v31, %v715_v42 }
 0x470   :  { %1261 = vmatpush3.bf16.msra.mxu1 %v1260_v53  ;;  %v717_v53 = vld [vmem:[%s2186_s4 + $0x340] sm:$0xff] }
 0x471   :  { %1263 = vmatprep.subr.bf16.mxu1 %v1262_v38  ;;  %v718_v38 = vld [vmem:[%s2186_s4 + $0x348] sm:$0xff] }
 0x472   :  { %v1332_v44 = vpack.c.bf16 %v718_v38, %v717_v53 }
 0x474   :  { %1265 = vmatpush3.bf16.msra.mxu1 %v1264_v46  ;;  %v1334_v46 = vpack.c.bf16 %v736_v43, %v735_v41 }
 0x475   :  { %1267 = vmatprep.subr.bf16.mxu1 %v1266_v52  ;;  %v719_v52 = vld [vmem:[%s2186_s4 + $0x350] sm:$0xff] }
 0x476   :  { %v1395_v19 = vpop.eup %1394  ;;  %v1336_v51 = vpack.c.bf16 %v720_v47, %v719_v52 }
 0x477   :  { %v1397_v8 = vpop.eup %1396 }
 0x478   :  { %1269 = vmatpush3.bf16.msra.mxu1 %v1268_v54  ;;  %v1399_v45 = vpop.eup %1398 }
 0x479   :  { %1271 = vmatprep.subr.bf16.mxu1 %v1270_v40  ;;  %v603_v54 = vadd.f32 1.0, %v1399_v45  ;;  %v721_v40 = vld [vmem:[%s2186_s4 + $0x360] sm:$0xff] }
 0x47a   :  { %v1340_v63 = vpack.c.bf16 %v722_v58, %v721_v40 }
 0x47b   :  { %1400 = vrcp.f32 %v603_v54 }
 0x47c   :  { %1273 = vmatpush3.bf16.msra.mxu1 %v1272_v3  ;;  %v723_v3 = vld [vmem:[%s2186_s4 + $0x370] sm:$0xff] }
 0x47d   :  { %1275 = vmatprep.subr.bf16.mxu1 %v1274_v61  ;;  %v1344_v61 = vpack.c.bf16 %v724_v56, %v723_v3 }
 0x480   :  { %1277 = vmatpush3.bf16.msra.mxu1 %v1276_v6 }
 0x481   :  { %1279 = vmatprep.subr.bf16.mxu1 %v1278_v7 }
 0x484   :  { %1281 = vmatpush3.bf16.msra.mxu1 %v1280_v10 }
 0x485   :  { %1315 = vmatprep.subr.bf16.mxu1 %v1314_v11  ;;  %v1401_v57 = vpop.eup %1400 }
 0x487   :  { %876 = vmatmul.mubr.f32.vlgmr.msra.gmra.mrb[2].mxu1 %v1395_v19 }
 0x488   :  { %1317 = vmatpush3.bf16.msra.mxu1 %v1316_v16  ;;  %1015 = vmatprep.mubr.f32.mxu1 %v1397_v8 }
 0x489   :  { %1319 = vmatprep.subr.bf16.mxu1 %v1318_v29 }
 0x48c   :  { %1321 = vmatpush3.bf16.msra.mxu1 %v1320_v0 }
 0x48d   :  { %1323 = vmatprep.subr.bf16.mxu1 %v1322_v23 }
 0x490   :  { %1325 = vmatpush3.bf16.msra.mxu1 %v1324_v36 }
 0x491   :  { %1327 = vmatprep.subr.bf16.mxu1 %v1326_v30 }
 0x494   :  { %1329 = vmatpush3.bf16.msra.mxu1 %v1328_v34 }
 0x495   :  { %1331 = vmatprep.subr.bf16.mxu1 %v1330_v37 }
 0x498   :  { %1333 = vmatpush3.bf16.msra.mxu1 %v1332_v44 }
 0x499   :  { %1335 = vmatprep.subr.bf16.mxu1 %v1334_v46 }
 0x49c   :  { %1337 = vmatpush3.bf16.msra.mxu1 %v1336_v51 }
 0x49d   :  { %1339 = vmatprep.subr.bf16.mxu1 %v1338_v55 }
 0x4a0   :  { %1341 = vmatpush3.bf16.msra.mxu1 %v1340_v63 }
 0x4a1   :  { %1343 = vmatprep.subr.bf16.mxu1 %v1342_v2 }
 0x4a4   :  { %1345 = vmatpush3.bf16.msra.mxu1 %v1344_v61 }
 0x4a7   :  { %1016 = vmatmul.mubr.f32.vlgmr.msra.gmra.mrb[4].mxu1 %v1401_v57 }
 0x53a   :  { %v1070_v60 = vpop.f32.mrb[0].mxu1 }
 0x53b   :  { %v1140_v4 = vpop.f32.mrb[2].mxu0  ;;  %v1071_v5 = vpop.f32.mrb[1].mxu1 }
 0x53c   :  { %v1072_v35 = vadd.f32 %v1071_v5, %v1070_v60  ;;  %v1141_v6 = vpop.f32.mrb[3].mxu0 }
 0x53d   :  { %v1142_v7 = vadd.f32 %v1141_v6, %v1140_v4 }
 0x55a   :  { %v1105_v39 = vpop.f32.mrb[2].mxu1 }
 0x55b   :  { %v1106_v49 = vpop.f32.mrb[3].mxu1 }
 0x55c   :  { %v1107_v28 = vadd.f32 %v1106_v49, %v1105_v39 }
 0x55e   :  { %v878_v9 = vadd.f32 %v1107_v28, %v1072_v35 }
 0x560   :  { %v948_v10 = vadd.f32 %v1142_v7, %v878_v9 }
 0x57a   :  { %v1175_v11 = vpop.f32.mrb[4].mxu1 }
 0x57b   :  { %v1176_v14 = vpop.f32.mrb[5].mxu1 }
 0x57c   :  { %v1177_v12 = vadd.f32 %v1176_v14, %v1175_v11 }
 0x57e   :  { %v1018_v24 = vadd.f32 %v1177_v12, %v948_v10 }
 0x580   :  { %1021 = vst [vmem:[%s2187_s5] sm:$0xff] %v1018_v24 }

</bundles_post_ra>
